<compile_context>
chip_gen: v7x
topology: tpu7x:2x2x1
jax: 0.10.0
libtpu: 0.0.40
codegen_flags: <defaults>
</compile_context>

<pallas_src>
import jax
import jax.numpy as jnp
from jax import lax
from jax.experimental import pallas as pl
from jax.experimental.pallas import tpu as pltpu


# ----------------------------------------------------------------------------- utils
def _round_up(x, m):
    return ((x + m - 1) // m) * m


def _pad_to(x, axis, size):
    pad = size - x.shape[axis]
    if pad <= 0:
        return x
    widths = [(0, 0)] * x.ndim
    widths[axis] = (0, pad)
    return jnp.pad(x, widths)


def _phys_bytes(rows, cols, itemsize):
    """Physical VMEM footprint of a (rows, cols) tile: the lane axis pads to 128,
    the sublane axis pads to the packed tile height (8 for f32, 16 for bf16)."""
    sub = 8 * (4 // itemsize)
    return _round_up(max(rows, 1), sub) * _round_up(max(cols, 1), 128) * itemsize


def _vmem_limit_bytes():
    """Generation-aware scoped-VMEM budget: ~3/4 of physical, capped at 96 MiB
    (v7x: 64 MiB/TC -> 48 MiB; v5e/v6e: 128 MiB -> 96 MiB)."""
    cap = None
    try:
        cap = pltpu.get_tpu_info().vmem_capacity_bytes
    except Exception:
        cap = None
    if not cap:
        cap = 64 * 1024 * 1024          # conservative (v7x per-TensorCore VMEM)
    return int(min(cap * 3 // 4, 96 * 1024 * 1024))


def _elementwise_dtype():
    """bf16 elementwise (tanh / adds) on v6e / v7x (bf16 VPU+EUP); f32 on v5e and
    older, where bf16 elementwise would only add converts."""
    try:
        kind = jax.devices()[0].device_kind.lower()
    except Exception:
        return jnp.float32
    if ("v6" in kind) or ("v7" in kind) or ("7x" in kind):
        return jnp.bfloat16
    return jnp.float32


def _choose_b_tile(B, T8, Tp, Dvp, Dap, Hp, cdt_size, ew_size, budget):
    """Largest legal batch tile whose *physical* per-step VMEM footprint fits the
    budget; prefers no batch padding, then a grid of >= 2 (two-TC split), then the
    biggest per-step tile."""

    def footprint(bt):
        rows = bt * T8
        f = 0
        f += 2 * _phys_bytes(rows, Dvp, cdt_size)                # visual tile (x2 buf)
        f += 2 * _phys_bytes(bt, Dap, cdt_size)                  # audio tile
        f += 2 * _phys_bytes(bt, Tp, 4)                          # output tile (f32)
        f += 2 * (_phys_bytes(Dvp, Hp, cdt_size)
                  + _phys_bytes(Dap, Hp, cdt_size))              # Wv / Wa
        f += 2 * 3 * _phys_bytes(1, Hp, 4)                       # bv / ba / we
        f += _phys_bytes(rows, Hp, 4)                            # pv (f32 accumulate)
        f += 3 * _phys_bytes(rows, Hp, ew_size)                  # tanh(pv), h, slack
        f += 2 * _phys_bytes(bt, Tp, 4)                          # energy / softmax temps
        return f

    candidates = list(range(8, _round_up(B, 8) + 1, 8))          # (bt, X) block-legal
    if B not in candidates:
        candidates.append(B)                                     # == full dim, legal
    fitting = [d for d in candidates if footprint(d) <= budget]
    if not fitting:                                              # robust last resort
        fitting = [min(candidates, key=footprint)]

    def score(d):
        b_pad = _round_up(B, d)
        grid = b_pad // d
        return (b_pad, 0 if grid >= 2 else 1, -d)

    b_tile = min(fitting, key=score)
    return b_tile, _round_up(B, b_tile)


# ----------------------------------------------------------------------------- kernel
def cross_modal_attention(visual, audio, params, *, compute_dtype=jnp.bfloat16):
    """params = (wv (Dv,H), bv (1,H), wa (Da,H), ba (1,H), we (1,H), be (1,1))."""
    B, T, Dv = visual.shape
    Da = audio.shape[-1]
    wv, bv, wa, ba, we, be = params
    H = wv.shape[1]

    cdt = jnp.dtype(compute_dtype)
    ew_dtype = _elementwise_dtype() if cdt == jnp.bfloat16 else jnp.float32

    T8 = _round_up(T, 8)       # sublane-aligned seq -> layout-free merge into rows
    Tp = _round_up(T, 128)     # lane-dense output width
    Hp = _round_up(H, 128)
    Dvp = _round_up(Dv, 8)
    Dap = _round_up(Da, 8)

    vmem_limit = _vmem_limit_bytes()
    b_tile, Bp = _choose_b_tile(B, T8, Tp, Dvp, Dap, Hp,
                                cdt.itemsize, jnp.dtype(ew_dtype).itemsize,
                                budget=int(vmem_limit * 0.7))
    grid = (Bp // b_tile,)

    # --- pad operands (zero padding is exact: padded hidden/feature units see zero
    #     weights/biases -> contribute 0; padded T lanes masked; padded B sliced) ---
    vis_p = _pad_to(_pad_to(_pad_to(visual, 2, Dvp), 1, T8), 0, Bp).astype(cdt)
    aud_p = _pad_to(_pad_to(audio, 1, Dap), 0, Bp).astype(cdt)
    wv_p = _pad_to(_pad_to(wv, 0, Dvp), 1, Hp).astype(cdt)
    wa_p = _pad_to(_pad_to(wa, 0, Dap), 1, Hp).astype(cdt)
    bv_p = _pad_to(bv, 1, Hp).astype(jnp.float32)          # f32 accumulate path
    ba_p = _pad_to(ba, 1, Hp).astype(jnp.float32)
    we_p = _pad_to(we, 1, Hp).astype(jnp.float32)
    be_p = be.reshape(1, 1).astype(jnp.float32)

    def kernel(vis_ref, aud_ref, wv_ref, bv_ref, wa_ref, ba_ref, we_ref, be_ref,
               out_ref):
        # ---- projections: one flattened MXU matmul per modality, f32 accumulation
        vis2 = vis_ref[...].reshape(b_tile * T8, Dvp)        # layout-free (T8 % 8 == 0)
        pv = jnp.dot(vis2, wv_ref[...],
                     preferred_element_type=jnp.float32) + bv_ref[...]   # (rows, Hp)
        pa = jnp.dot(aud_ref[...], wa_ref[...],
                     preferred_element_type=jnp.float32) + ba_ref[...]   # (bt, Hp)

        # ---- tanh / broadcast add / tanh (bf16 on v6e/v7x, f32 on v5e) -----------
        pv_t = jnp.tanh(pv.astype(ew_dtype)).reshape(b_tile, T8, Hp)
        pa_t = jnp.tanh(pa.astype(ew_dtype))
        h = jnp.tanh(pv_t + pa_t[:, None, :])                # (bt, T8, Hp)

        # ---- energy: multiply-reduce in f32 (+ scalar bias from SMEM) ------------
        # TODO(synk): if a bundle dump shows the XLU lane-reduce binding, switch to
        # an MXU matvec jnp.dot(h2d, we_col) instead of the cross-lane sum.
        energy = jnp.sum(h.astype(jnp.float32) * we_ref[...][None, :, :], axis=-1)
        energy = energy + be_ref[0, 0]                       # (bt, T8) f32

        # ---- pad/mask to a lane-dense Tp row BEFORE softmax (padded lanes -> 0) --
        if Tp > T8:
            energy = jnp.concatenate(
                [energy, jnp.full((b_tile, Tp - T8), -1e30, jnp.float32)], axis=-1)
        if Tp > T:
            lane = lax.broadcasted_iota(jnp.int32, (b_tile, Tp), 1)
            energy = jnp.where(lane < T, energy, -1e30)

        # ---- numerically stable softmax over T (exact normalisation) -------------
        m = jnp.max(energy, axis=-1, keepdims=True)
        p = jnp.exp(energy - m)
        attn = p / jnp.sum(p, axis=-1, keepdims=True)
        out_ref[...] = attn.astype(out_ref.dtype)            # full-width (bt, Tp) store

    resident = lambda b: (0, 0)   # weights/biases pinned across grid steps

    out_padded = pl.pallas_call(
        kernel,
        out_shape=jax.ShapeDtypeStruct((Bp, Tp), jnp.float32),
        grid=grid,
        in_specs=[
            pl.BlockSpec((b_tile, T8, Dvp), lambda b: (b, 0, 0)),   # visual tile
            pl.BlockSpec((b_tile, Dap), lambda b: (b, 0)),          # audio tile
            pl.BlockSpec((Dvp, Hp), resident),                      # Wv
            pl.BlockSpec((1, Hp), resident),                        # bv
            pl.BlockSpec((Dap, Hp), resident),                      # Wa
            pl.BlockSpec((1, Hp), resident),                        # ba
            pl.BlockSpec((1, Hp), resident),                        # we (energy row)
            pl.BlockSpec(memory_space=pltpu.MemorySpace.SMEM),      # be (1,1) scalar
        ],
        out_specs=pl.BlockSpec((b_tile, Tp), lambda b: (b, 0)),
        compiler_params=pltpu.CompilerParams(
            dimension_semantics=("parallel",),      # batch tiles shard across TCs
            vmem_limit_bytes=vmem_limit,
        ),
    )(vis_p, aud_p, wv_p, bv_p, wa_p, ba_p, we_p, be_p)

    return out_padded[:B, :T]


# ----------------------------------------------------------------------------- params / reference
def init_params(key, vis_dim, aud_dim, hidden_dim):
    """Mirrors the PyTorch module: xavier_uniform weights, default
    uniform(-1/sqrt(fan_in), 1/sqrt(fan_in)) biases. Stored (in, out) so the
    kernel computes x @ W + b."""
    k_wv, k_bv, k_wa, k_ba, k_we, k_be = jax.random.split(key, 6)

    def xavier(k, fan_in, fan_out):
        bound = (6.0 / (fan_in + fan_out)) ** 0.5
        return jax.random.uniform(k, (fan_in, fan_out), jnp.float32, -bound, bound)

    def bias(k, fan_in, out_dim):
        bound = 1.0 / (fan_in ** 0.5)
        return jax.random.uniform(k, (1, out_dim), jnp.float32, -bound, bound)

    wv = xavier(k_wv, vis_dim, hidden_dim)           # (Dv, H)
    bv = bias(k_bv, vis_dim, hidden_dim)             # (1, H)
    wa = xavier(k_wa, aud_dim, hidden_dim)           # (Da, H)
    ba = bias(k_ba, aud_dim, hidden_dim)             # (1, H)
    we = xavier(k_we, hidden_dim, 1).T               # (1, H) energy weight row
    be = bias(k_be, hidden_dim, 1)                   # (1, 1) energy bias
    return wv, bv, wa, ba, we, be


def reference(visual, audio, params):
    """Pure-JAX reference matching the PyTorch forward exactly."""
    wv, bv, wa, ba, we, be = params
    proj_vis = jnp.tanh(visual @ wv + bv[None])              # (B, T, H)
    proj_aud = jnp.tanh(audio @ wa + ba)                     # (B, H)
    combined = jnp.tanh(proj_vis + proj_aud[:, None, :])     # (B, T, H)
    energy = jnp.sum(combined * we[None], axis=-1) + be      # (B, T)
    return jax.nn.softmax(energy, axis=-1)


if __name__ == "__main__":
    B, T, VIS_DIM, AUD_DIM, HIDDEN = 2, 8, 32, 16, 32

    key = jax.random.PRNGKey(0)
    k_params, k_vis, k_aud = jax.random.split(key, 3)

    params = init_params(k_params, VIS_DIM, AUD_DIM, HIDDEN)
    visual = jax.random.normal(k_vis, (B, T, VIS_DIM), jnp.float32)
    audio = jax.random.normal(k_aud, (B, AUD_DIM), jnp.float32)

    ref = reference(visual, audio, params)

    # default path: bf16 MXU operands, bf16 elementwise on v6e/v7x (f32 on v5e)
    attn = jax.block_until_ready(cross_modal_attention(visual, audio, params))
    assert attn.shape == (B, T)
    assert jnp.allclose(attn, ref, atol=2e-2, rtol=2e-2), (attn, ref)
    assert jnp.allclose(jnp.sum(attn, axis=-1), 1.0, atol=1e-5)

    # full-f32 path: tight match against the pure-JAX reference
    attn32 = jax.block_until_ready(
        cross_modal_attention(visual, audio, params, compute_dtype=jnp.float32))
    assert jnp.allclose(attn32, ref, atol=1e-4, rtol=1e-4), (attn32, ref)

    print("KERNEL_OK")
</pallas_src>

<mosaic_0001>
module attributes {stable_mosaic.version = 11 : i64} {
  func.func @kernel(%arg0: i32, %arg1: memref<2x8x32xbf16, #tpu.memory_space<vmem>>, %arg2: memref<2x16xbf16, #tpu.memory_space<vmem>>, %arg3: memref<32x128xbf16, #tpu.memory_space<vmem>>, %arg4: memref<1x128xf32, #tpu.memory_space<vmem>>, %arg5: memref<16x128xbf16, #tpu.memory_space<vmem>>, %arg6: memref<1x128xf32, #tpu.memory_space<vmem>>, %arg7: memref<1x128xf32, #tpu.memory_space<vmem>>, %arg8: memref<1x1xf32, #tpu.memory_space<smem>>, %arg9: memref<2x128xf32, #tpu.memory_space<vmem>>) attributes {dimension_semantics = [#tpu.dimension_semantics<parallel>], iteration_bounds = array<i64: 1>, scalar_prefetch = 0 : i64, scratch_operands = 0 : i64, tpu.core_type = #tpu.core_type<tc>, window_params = [{transform_indices = @transform_0, window_bounds = array<i64: 2, 8, 32>}, {transform_indices = @transform_1, window_bounds = array<i64: 2, 16>}, {pipeline_mode = #tpu.pipeline_mode<synchronous>, transform_indices = @transform_2, window_bounds = array<i64: 32, 128>}, {pipeline_mode = #tpu.pipeline_mode<synchronous>, transform_indices = @transform_3, window_bounds = array<i64: 1, 128>}, {pipeline_mode = #tpu.pipeline_mode<synchronous>, transform_indices = @transform_4, window_bounds = array<i64: 16, 128>}, {pipeline_mode = #tpu.pipeline_mode<synchronous>, transform_indices = @transform_5, window_bounds = array<i64: 1, 128>}, {pipeline_mode = #tpu.pipeline_mode<synchronous>, transform_indices = @transform_6, window_bounds = array<i64: 1, 128>}, {transform_indices = @transform_7, window_bounds = array<i64: 1, 1>}, {transform_indices = @transform_8, window_bounds = array<i64: 2, 128>}]} {
    %c0 = arith.constant 0 : index
    %c0_0 = arith.constant 0 : index
    %c0_1 = arith.constant 0 : index
    %0 = vector.load %arg1[%c0, %c0_0, %c0_1] : memref<2x8x32xbf16, #tpu.memory_space<vmem>>, vector<2x8x32xbf16>
    %1 = vector.shape_cast %0 : vector<2x8x32xbf16> to vector<16x32xbf16>
    %c0_2 = arith.constant 0 : index
    %c0_3 = arith.constant 0 : index
    %2 = vector.load %arg3[%c0_2, %c0_3] : memref<32x128xbf16, #tpu.memory_space<vmem>>, vector<32x128xbf16>
    %cst = arith.constant dense<0.000000e+00> : vector<16x128xf32>
    %3 = tpu.matmul %1, %2, %cst {dimension_numbers = #tpu.dot_dimension_numbers<[1], [0], [0], [1], [0, 0, 1, 1], [], []>} : vector<16x32xbf16>, vector<32x128xbf16>, vector<16x128xf32> -> vector<16x128xf32>
    %c0_4 = arith.constant 0 : index
    %c0_5 = arith.constant 0 : index
    %4 = vector.load %arg4[%c0_4, %c0_5] : memref<1x128xf32, #tpu.memory_space<vmem>>, vector<1x128xf32>
    %5 = vector.broadcast %4 : vector<1x128xf32> to vector<16x128xf32>
    %6 = arith.addf %3, %5 : vector<16x128xf32>
    %c0_6 = arith.constant 0 : index
    %c0_7 = arith.constant 0 : index
    %7 = vector.load %arg2[%c0_6, %c0_7] : memref<2x16xbf16, #tpu.memory_space<vmem>>, vector<2x16xbf16>
    %c0_8 = arith.constant 0 : index
    %c0_9 = arith.constant 0 : index
    %8 = vector.load %arg5[%c0_8, %c0_9] : memref<16x128xbf16, #tpu.memory_space<vmem>>, vector<16x128xbf16>
    %cst_10 = arith.constant dense<0.000000e+00> : vector<2x128xf32>
    %9 = tpu.matmul %7, %8, %cst_10 {dimension_numbers = #tpu.dot_dimension_numbers<[1], [0], [0], [1], [0, 0, 1, 1], [], []>} : vector<2x16xbf16>, vector<16x128xbf16>, vector<2x128xf32> -> vector<2x128xf32>
    %c0_11 = arith.constant 0 : index
    %c0_12 = arith.constant 0 : index
    %10 = vector.load %arg6[%c0_11, %c0_12] : memref<1x128xf32, #tpu.memory_space<vmem>>, vector<1x128xf32>
    %11 = vector.broadcast %10 : vector<1x128xf32> to vector<2x128xf32>
    %12 = arith.addf %9, %11 : vector<2x128xf32>
    %13 = math.tanh %6 : vector<16x128xf32>
    %14 = vector.shape_cast %13 : vector<16x128xf32> to vector<2x8x128xf32>
    %15 = math.tanh %12 : vector<2x128xf32>
    %16 = vector.shape_cast %15 : vector<2x128xf32> to vector<2x1x128xf32>
    %17 = vector.broadcast %16 : vector<2x1x128xf32> to vector<2x8x128xf32>
    %18 = arith.addf %14, %17 : vector<2x8x128xf32>
    %19 = math.tanh %18 : vector<2x8x128xf32>
    %c0_13 = arith.constant 0 : index
    %c0_14 = arith.constant 0 : index
    %20 = vector.load %arg7[%c0_13, %c0_14] : memref<1x128xf32, #tpu.memory_space<vmem>>, vector<1x128xf32>
    %21 = vector.shape_cast %20 : vector<1x128xf32> to vector<1x1x128xf32>
    %22 = vector.broadcast %21 : vector<1x1x128xf32> to vector<2x8x128xf32>
    %23 = arith.mulf %19, %22 : vector<2x8x128xf32>
    %cst_15 = arith.constant dense<0.000000e+00> : vector<2x8xf32>
    %24 = vector.multi_reduction <add>, %23, %cst_15 [2] : vector<2x8x128xf32> to vector<2x8xf32>
    %c0_16 = arith.constant 0 : index
    %c0_17 = arith.constant 0 : index
    %25 = memref.load %arg8[%c0_16, %c0_17] : memref<1x1xf32, #tpu.memory_space<smem>>
    %26 = vector.broadcast %25 : f32 to vector<2x8xf32>
    %27 = arith.addf %24, %26 : vector<2x8xf32>
    %cst_18 = arith.constant -1.000000e+30 : f32
    %28 = vector.broadcast %cst_18 : f32 to vector<2x120xf32>
    %29 = tpu.concatenate %27, %28 in 1 : vector<2x8xf32>, vector<2x120xf32> -> vector<2x128xf32>
    %30 = tpu.iota {dimensions = array<i32: 1>} : vector<2x128xi32>
    %c8_i32 = arith.constant 8 : i32
    %31 = vector.broadcast %c8_i32 : i32 to vector<2x128xi32>
    %32 = arith.cmpi slt, %30, %31 : vector<2x128xi32>
    %cst_19 = arith.constant -1.000000e+30 : f32
    %33 = vector.broadcast %cst_19 : f32 to vector<2x128xf32>
    %34 = arith.select %32, %29, %33 : vector<2x128xi1>, vector<2x128xf32>
    %cst_20 = arith.constant dense<0xFF800000> : vector<2xf32>
    %35 = vector.multi_reduction <maximumf>, %34, %cst_20 [1] : vector<2x128xf32> to vector<2xf32>
    %36 = vector.shape_cast %35 : vector<2xf32> to vector<2x1xf32>
    %37 = vector.broadcast %36 : vector<2x1xf32> to vector<2x128xf32>
    %38 = arith.subf %34, %37 : vector<2x128xf32>
    %39 = math.exp %38 : vector<2x128xf32>
    %cst_21 = arith.constant dense<0.000000e+00> : vector<2xf32>
    %40 = vector.multi_reduction <add>, %39, %cst_21 [1] : vector<2x128xf32> to vector<2xf32>
    %41 = vector.shape_cast %40 : vector<2xf32> to vector<2x1xf32>
    %42 = vector.broadcast %41 : vector<2x1xf32> to vector<2x128xf32>
    %43 = arith.divf %39, %42 : vector<2x128xf32>
    %c0_22 = arith.constant 0 : index
    %c0_23 = arith.constant 0 : index
    %44 = vector.load %arg9[%c0_22, %c0_23] : memref<2x128xf32, #tpu.memory_space<vmem>>, vector<2x128xf32>
    tpu.vector_store %arg9[%c0_22, %c0_23], %43 {strides = array<i32>} : memref<2x128xf32, #tpu.memory_space<vmem>>, vector<2x128xf32>,
    return
  }
  func.func @transform_0(%arg0: i32) -> (i32, i32, i32) {
    %c0_i32 = arith.constant 0 : i32
    %c0_i32_0 = arith.constant 0 : i32
    %c0_i32_1 = arith.constant 0 : i32
    return %arg0, %c0_i32, %c0_i32_0 : i32, i32, i32
  }
  func.func @transform_1(%arg0: i32) -> (i32, i32) {
    %c0_i32 = arith.constant 0 : i32
    %c0_i32_0 = arith.constant 0 : i32
    return %arg0, %c0_i32 : i32, i32
  }
  func.func @transform_2(%arg0: i32) -> (i32, i32) {
    %c0_i32 = arith.constant 0 : i32
    %c0_i32_0 = arith.constant 0 : i32
    %c0_i32_1 = arith.constant 0 : i32
    return %c0_i32, %c0_i32_0 : i32, i32
  }
  func.func @transform_3(%arg0: i32) -> (i32, i32) {
    %c0_i32 = arith.constant 0 : i32
    %c0_i32_0 = arith.constant 0 : i32
    %c0_i32_1 = arith.constant 0 : i32
    return %c0_i32, %c0_i32_0 : i32, i32
  }
  func.func @transform_4(%arg0: i32) -> (i32, i32) {
    %c0_i32 = arith.constant 0 : i32
    %c0_i32_0 = arith.constant 0 : i32
    %c0_i32_1 = arith.constant 0 : i32
    return %c0_i32, %c0_i32_0 : i32, i32
  }
  func.func @transform_5(%arg0: i32) -> (i32, i32) {
    %c0_i32 = arith.constant 0 : i32
    %c0_i32_0 = arith.constant 0 : i32
    %c0_i32_1 = arith.constant 0 : i32
    return %c0_i32, %c0_i32_0 : i32, i32
  }
  func.func @transform_6(%arg0: i32) -> (i32, i32) {
    %c0_i32 = arith.constant 0 : i32
    %c0_i32_0 = arith.constant 0 : i32
    %c0_i32_1 = arith.constant 0 : i32
    return %c0_i32, %c0_i32_0 : i32, i32
  }
  func.func @transform_7(%arg0: i32) -> (i32, i32) {
    %c0_i32 = arith.constant 0 : i32
    %c0_i32_0 = arith.constant 0 : i32
    %c0_i32_1 = arith.constant 0 : i32
    return %c0_i32, %c0_i32_0 : i32, i32
  }
  func.func @transform_8(%arg0: i32) -> (i32, i32) {
    %c0_i32 = arith.constant 0 : i32
    %c0_i32_0 = arith.constant 0 : i32
    return %arg0, %c0_i32 : i32, i32
  }
}

</mosaic_0001>

<bundles_post_ra>
// kernel: tpu_custom_call.1
= control target key start
LH: loop header
LB: loop body
LE: loop exit
PB: predicated region body
PF: predicated region fallthrough
CT: control target
= control target key end

     0   :  { %14 = vsyncpa [#allocation4], 0  ;;  %s533_s0 = inlined_call_operand.hbm [shape: bf16[2,8,32], index: 0, kind: input, shape index: {}]   ;;  %s534_s1 = inlined_call_operand.vmem [shape: bf16[2,16], index: 1, kind: input, shape index: {}]   ;;  %s535_s2 = inlined_call_operand.hbm [shape: bf16[32,128], index: 2, kind: input, shape index: {}]   ;;  %s536_s3 = inlined_call_operand.vmem [shape: f32[1,128], index: 3, kind: input, shape index: {}]   ;;  %s537_s4 = inlined_call_operand.vmem [shape: bf16[16,128], index: 4, kind: input, shape index: {}]   ;;  %s538_s5 = inlined_call_operand.vmem [shape: f32[1,128], index: 5, kind: input, shape index: {}]   ;;  %s539_s6 = inlined_call_operand.vmem [shape: f32[1,128], index: 6, kind: input, shape index: {}]   ;;  %s540_s7 = inlined_call_operand.<no memory space> [shape: f32[1,1], index: 7, kind: input, shape index: {}]   ;;  %s541_s8 = inlined_call_operand.hbm [shape: f32[2,128], index: 8, kind: output, shape index: {}]  }
   0x1   :  { %15 = vsyncpa [#allocation7], 0 }
   0x2   :  { %16 = vsyncpa [#allocation5], 0  ;;  %s426_s27 = smov [#allocation3]   ;;  %s354_s9 = scalar_lea.hbm %s533_s0, 128 }
   0x3   :  { %s22_s28 = sshll.u32 %s426_s27, 4  ;;  %p355_p0 = scmp.ne.s32.totalorder %s533_s0, %s354_s9  ;;  %s23_s28 = int_to_ptr.vmem [resolvable:$true] %s22_s28 }
   0x4   :  { %p358_p1 = scmp.lt.u32.totalorder %s354_s9, %s533_s0 }
   0x6   :  { %p360_p2 = pnand %p358_p1, %p355_p0 }
   0x8   :  { %363 = shalt.err (!%p360_p2)
}
   0x9   :  { %s364_s14 = scalar_lea.vmem %s23_s28, 128  ;;  %p369_p4 = scmp.lt.s32.totalorder %s23_s28, %s23_s28 }
   0xa   :  { %p365_p3 = scmp.ne.s32.totalorder %s23_s28, %s364_s14  ;;  %p370_p5 = scmp.lt.s32.totalorder %s364_s14, %s364_s14 }
   0xc   :  { %p371_p6 = por %p370_p5, %p369_p4 }
   0xe   :  { %p372_p7 = pnand %p371_p6, %p365_p3 }
  0x10   :  { %375 = shalt.err (!%p372_p7)
}
  0x11   :  { %s427_s15 = smov 64   ;;  %s428_s16 = smov 4  }
  0x12   :  { %28 = dma.hbm_to_vmem [thread:$0]  %s533_s0, 128, %s23_s28, [#allocation4], %s427_s15, %s427_s15, %s428_s16  }
  0x13   :  { %s429_s19 = smov [#allocation6]   ;;  %s376_s23 = scalar_lea.hbm %s535_s2, 256 }
  0x14   :  { %s36_s20 = sshll.u32 %s429_s19, 4  ;;  %p377_p8 = scmp.ne.s32.totalorder %s535_s2, %s376_s23  ;;  %s37_s20 = int_to_ptr.vmem [resolvable:$true] %s36_s20 }
  0x15   :  { %p380_p9 = scmp.lt.u32.totalorder %s376_s23, %s535_s2 }
  0x17   :  { %p382_p10 = pnand %p380_p9, %p377_p8 }
  0x19   :  { %385 = shalt.err (!%p382_p10)
}
  0x1a   :  { %s386_s29 = scalar_lea.vmem %s37_s20, 256  ;;  %p391_p12 = scmp.lt.s32.totalorder %s37_s20, %s37_s20 }
  0x1b   :  { %p387_p11 = scmp.ne.s32.totalorder %s37_s20, %s386_s29  ;;  %p392_p13 = scmp.lt.s32.totalorder %s386_s29, %s386_s29 }
  0x1d   :  { %p393_p0 = por %p392_p13, %p391_p12 }
  0x1f   :  { %p394_p1 = pnand %p393_p0, %p387_p11 }
  0x21   :  { %397 = shalt.err (!%p394_p1)
}
  0x22   :  { %42 = dma.hbm_to_vmem [thread:$0]  %s535_s2, 256, %s37_s20, [#allocation7], %s427_s15, %s427_s15, %s428_s16  }
  0x23   :  { %420 = dma.done.wait [#allocation4], 128  }
  0x24   :  { %421 = vsyncadd [#allocation4], 4294967168 }
  0x25   :  { %422 = dma.done.wait [#allocation7], 256  }
  0x26   :  { %423 = vsyncadd [#allocation7], 4294967040  ;;  %v430_v0 = vmov 0.0   ;;  %vm431_vm0 = vmmov 0   ;;  %v336_v1 = vld [vmem:[#allocation6] sm:$0xff]   ;;  %v337_v2 = vld [vmem:[%s537_s4] sm:$0xff]   ;;  %v202_v6 = vlaneseq  ;;  %v249_v44 = vstv %s540_s7 }
  0x27   :  { %314 = vmatprep.subr.bf16.mxu0 %v430_v0  ;;  %322 = vmatprep.subr.bf16.mxu1 %v430_v0  ;;  %v135_v3 = vld [vmem:[%s534_s1] sm:$0x1]  ;;  %vm151_vm1 = vcmask 130048   ;;  %v338_v4 = vld [vmem:[#allocation6 + $0x8] sm:$0xff]   ;;  %vm90_vm2 = vcmask 261120   ;;  %vm264_vm3 = vcmask 1041409  }
  0x28   :  { %324 = vmatprep.mubr.msk.bf16.mxu1 %vm431_vm0, %v430_v0  ;;  %318 = vmatprep.mubr.msk.bf16.mxu0 %vm431_vm0, %v430_v0  ;;  %v339_v5 = vld [vmem:[#allocation3] sm:$0xff]   ;;  %v203_v7 = vshrl.u32 %v202_v6, 7  ;;  %v255_v8 = vand.u32 127, %v202_v6  ;;  %v432_v15 = vmov 1966171168   ;;  %vm267_vm4 = vcmask 64512  }
  0x29   :  { %315 = vmatpush3.bf16.msra.mxu0 %v336_v1  ;;  %323 = vmatpush3.bf16.msra.mxu1 %v337_v2  ;;  %v305_v10 = vld [vmem:[%s538_s5] ss:$0 sm:$0xff]  ;;  %v200_v16 = vunpack.c.l.s4 %v432_v15  ;;  %vm271_vm6 = vcmask 1041408  }
  0x2a   :  { %316 = vmatprep.subr.bf16.mxu0 %v430_v0  ;;  %v258_v9 = vsub.s32 %v255_v8, %v203_v7  ;;  %v300_v14 = vld [vmem:[%s536_s3] ss:$0 sm:$0xff]  ;;  %v223_v29 = vsub.s32 0, %v203_v7  ;;  %vm269_vm5 = vcmp.lt.s32.totalorder %v255_v8, 8 }
  0x2b   :  { %v201_v23 = vunpack.c.0.s8 %v200_v16  ;;  %v308_v39 = vld [vmem:[%s539_s6] ss:$0 sm:$0xff]  ;;  %s433_s6 = smov [#allocation8]  }
  0x2c   :  { %325 = vmatmul.mubr.msk.bf16.vlgmr.msra.gmra.mrb[0].mxu1 %vm151_vm1, %v135_v3  ;;  %s290_s7 = sshll.u32 %s433_s6, 4  ;;  %s291_s7 = int_to_ptr.vmem [resolvable:$true] %s290_s7 }
  0x2d   :  { %317 = vmatpush3.bf16.msra.mxu0 %v338_v4  ;;  %v204_v26 = vsub.s32 %v201_v23, %v203_v7  ;;  %s398_s15 = scalar_lea.vmem %s291_s7, 32  ;;  %p403_p3 = scmp.lt.s32.totalorder %s291_s7, %s291_s7 }
  0x2e   :  { %p399_p2 = scmp.ne.s32.totalorder %s291_s7, %s398_s15  ;;  %p404_p4 = scmp.lt.s32.totalorder %s398_s15, %s398_s15 }
  0x30   :  { %319 = vmatmul.mubr.msk.bf16.vlgmr.msra.gmra.mrb[0].mxu0 %vm90_vm2, %v339_v5  ;;  %p405_p5 = por %p404_p4, %p403_p3 }
  0x32   :  { %p406_p6 = pnand %p405_p5, %p399_p2 }
  0xff   :  { %v189_v11 = vpop.f32.mrb[0].mxu1 }
 0x100   :  { %v190_v12 = vadd.f32 %v305_v10, %v189_v11  ;;  %v326_v13 = vpop.f32.mrb[1].mxu1 }
 0x101   :  { %v192_v17 = vpop.f32.mrb[2].mxu1 }
 0x102   :  { %340 = vtanh.f32 %v190_v12  ;;  %v327_v18 = vpop.f32.mrb[3].mxu1 }
 0x103   :  { %v128_v19 = vpop.f32.mrb[0].mxu0 }
 0x104   :  { %v129_v20 = vadd.f32 %v300_v14, %v128_v19  ;;  %v320_v21 = vpop.f32.mrb[1].mxu0 }
 0x105   :  { %v131_v22 = vpop.f32.mrb[2].mxu0 }
 0x106   :  { %v321_v24 = vpop.f32.mrb[3].mxu0  ;;  %342 = vtanh.f32 %v129_v20  ;;  %v132_v25 = vadd.f32 %v300_v14, %v131_v22 }
 0x108   :  { %344 = vtanh.f32 %v132_v25 }
 0x10c   :  { %v341_v27 = vpop.eup %340 }
 0x10d   :  { %v205_v28 = vrot.slane %v341_v27, %v204_v26 }
 0x10f   :  { %v206_v30 = vcombine.high %v205_v28, %v205_v28  ;;  %v213_v31 = vrot.slane %v205_v28, %v204_v26 }
 0x110   :  { %v343_v32 = vpop.eup %342 }
 0x111   :  { %v220_v33 = vrot.slane %v206_v30, %v204_v26  ;;  %v224_v34 = vrot.slane %v213_v31, %v223_v29 }
 0x112   :  { %v345_v37 = vpop.eup %344 }
 0x113   :  { %v228_v35 = vrot.slane %v220_v33, %v223_v29  ;;  %v231_v36 = vadd.f32 %v343_v32, %v224_v34 }
 0x115   :  { %v232_v38 = vadd.f32 %v345_v37, %v228_v35  ;;  %346 = vtanh.f32 %v231_v36 }
 0x117   :  { %348 = vtanh.f32 %v232_v38 }
 0x11f   :  { %v347_v40 = vpop.eup %346 }
 0x120   :  { %v242_v41 = vmul.f32 %v347_v40, %v308_v39 }
 0x121   :  { %v349_v42 = vpop.eup %348 }
 0x122   :  { %244 = vadd.xlane.f32.xlu0 %v242_v41  ;;  %v243_v43 = vmul.f32 %v349_v42, %v308_v39 }
 0x126   :  { %246 = vadd.xlane.f32.xlu0 %v243_v43 }
 0x1af   :  { %v245_v45 = vpop.xlane.xlu0 %244 }
 0x1b0   :  { %v250_v46 = vadd.f32 %v249_v44, %v245_v45 }
 0x1b2   :  { %v259_v49 = vrot.slane %v250_v46, %v258_v9 }
 0x1b3   :  { %v247_v47 = vpop.xlane.xlu0 %246 }
 0x1b4   :  { %v251_v48 = vadd.f32 %v249_v44, %v247_v47 }
 0x1b6   :  { %v263_v50 = vrot.slane %v251_v48, %v258_v9 }
 0x1b8   :  { %v265_v51 = vsel %vm264_vm3, %v263_v50, %v259_v49 }
 0x1b9   :  { %v268_v52 = vsel %vm267_vm4, %v265_v51, -1e+30 }
 0x1ba   :  { %v270_v53 = vsel %vm269_vm5, %v268_v52, -1e+30 }
 0x1bb   :  { %v272_v54 = vsel %vm271_vm6, %v270_v53, -inf }
 0x1bc   :  { %273 = vmax.xlane.f32.xlu1 %v272_v54 }
 0x249   :  { %v274_v55 = vpop.xlane.xlu1 %273 }
 0x24a   :  { %v275_v56 = vsub.f32 %v270_v53, %v274_v55 }
 0x24c   :  { %v276_v57 = vmul.f32 1.442695, %v275_v56 }
 0x24e   :  { %350 = vpow2.f32 %v276_v57 }
 0x258   :  { %v351_v58 = vpop.eup %350 }
 0x259   :  { %v278_v59 = vsel %vm271_vm6, %v351_v58, 0.0 }
 0x25a   :  { %279 = vadd.xlane.f32.xlu1 %v278_v59 }
 0x2e7   :  { %v280_v60 = vpop.xlane.xlu1 %279 }
 0x2e8   :  { %352 = vrcp.f32 %v280_v60 }
 0x2f2   :  { %v353_v61 = vpop.eup %352 }
 0x2f3   :  { %v282_v62 = vmul.f32 %v353_v61, %v351_v58 }
 0x2f5   :  { %283 = vst [vmem:[#allocation8] sm:$0x3] %v282_v62 }
 0x2f6   :  { %409 = shalt.err (!%p406_p6)
}
 0x2f7   :  { %s410_s18 = scalar_lea.hbm %s541_s8, 32 }
 0x2f8   :  { %p411_p7 = scmp.ne.s32.totalorder %s541_s8, %s410_s18  ;;  %p414_p8 = scmp.lt.u32.totalorder %s410_s18, %s541_s8 }
 0x2fa   :  { %p416_p9 = pnand %p414_p8, %p411_p7 }
 0x2fc   :  { %419 = shalt.err (!%p416_p9)
}
 0x2fd   :  { %293 = dma.vmem_to_hbm [thread:$0]  %s291_s7, 32, %s541_s8, [#allocation5]  }
 0x2fe   :  { %424 = dma.done.wait [#allocation5], 32  }
 0x2ff   :  { %425 = vsyncadd [#allocation5], 4294967264 }
 0x300   :  { %297 = vsyncpa [#allocation4], 1 }
 0x301   :  { %298 = vsyncpa [#allocation7], 1 }
 0x302   :  { %299 = vsyncpa [#allocation5], 1 }

</bundles_post_ra>
